<compile_context>
chip_gen: v5e
topology: v5e:2x2
jax: 0.10.0
libtpu: 0.0.40
codegen_flags: <defaults>
</compile_context>

<pallas_src>
import jax
import jax.numpy as jnp
from jax.experimental import pallas as pl
from jax.experimental.pallas import tpu as pltpu


def _utt_rnn_kernel(bert_hbm, wih_ref, whh_ref, bias_ref, h0_ref, out_ref,
                    cls_buf, dma_sem):
    """Fused CLS-gather + tanh-RNN, single program, fully VMEM resident.

    bert_hbm : (B*T, max_len, 768) f32, raw HBM ref (pl.ANY)
    wih_ref  : (768, H) bf16 VMEM   (W_ih^T, prepared once)
    whh_ref  : (H, H)   f32  VMEM   (W_hh^T, prepared once)
    bias_ref : (1, H)   f32  VMEM   (b_ih + b_hh, prepared once)
    h0_ref   : (1, B, H) f32 VMEM   (init_hidden)
    out_ref  : (B, H)   f32  VMEM   (output of the last time step)
    cls_buf  : (B*T, 768) f32 VMEM scratch (CLS rows landing buffer)
    dma_sem  : DMA semaphore
    """
    bt = cls_buf.shape[0]
    b, _ = out_ref.shape
    t_steps = bt // b  # static: all shapes are compile-time constants

    # 1) Single strided DMA: only the CLS token (position 0) of every utterance
    #    is read from HBM -- (B*T, 768) out of the (B*T, max_len, 768) slab.
    cp = pltpu.make_async_copy(bert_hbm.at[:, 0, :], cls_buf, dma_sem)
    cp.start()
    cp.wait()

    # 2) Hoisted input projection: one (B*T,768)@(768,H) MXU contraction.
    #    bf16 operands (in-kernel cast = VPU filler), f32 accumulation,
    #    bias folded in once (mathematically identical to adding it per step).
    x = cls_buf[...].astype(jnp.bfloat16)
    proj = jnp.dot(x, wih_ref[...], preferred_element_type=jnp.float32)
    proj = proj + bias_ref[...]                       # (B*T, H), rows batch-major

    whh = whh_ref[...]                                # (H, H) f32
    hidden = h0_ref[0]                                # (B, H) f32

    # 3) Serial recurrence, fully unrolled (t_steps is a trace-time constant).
    #    Row b*T + t of proj is utterance t of dialogue b; the per-step gather
    #    reorders only the H-wide projection in vregs (sublane slices + concat),
    #    never the 768-wide activations.
    for t in range(t_steps):
        p_t = jnp.concatenate(
            [proj[bb * t_steps + t: bb * t_steps + t + 1, :] for bb in range(b)],
            axis=0)                                   # (B, H) rows of time step t
        hidden = jnp.tanh(
            p_t + jnp.dot(hidden, whh, preferred_element_type=jnp.float32))

    out_ref[...] = hidden.astype(out_ref.dtype)


def prepare_rnn_params(w_ih, w_hh, b_ih, b_hh):
    """One-time RNN parameter prep, hoisted out of the forward path.

    w_ih: (H, 768), w_hh: (H, H), b_ih/b_hh: (H,)  (PyTorch nn.RNN layout).
    """
    wih_t = jnp.asarray(w_ih.T, jnp.bfloat16)                    # (768, H) bf16
    whh_t = jnp.asarray(w_hh.T, jnp.float32)                     # (H, H)   f32
    bias = (b_ih + b_hh).reshape(1, -1).astype(jnp.float32)      # (1, H)   f32
    return wih_t, whh_t, bias


def utterance_embedder_forward(bert_last_hidden, num_turns,
                               wih_t, whh_t, bias, init_hidden):
    """Mirrors Utterance_Embedder.forward given the BERT last-hidden-state.

    bert_last_hidden: (batch*num_turns, max_len, 768) f32 -- stays in HBM.
    init_hidden     : (1, batch, rnn_hidden) f32.
    Returns (batch, rnn_hidden) f32 == rnn(sentence_rep, init_hidden)[0][-1].
    """
    bt, _, bert_dim = bert_last_hidden.shape
    batch = bt // num_turns
    rnn_hidden = whh_t.shape[0]

    vmem = pl.BlockSpec(memory_space=pltpu.MemorySpace.VMEM)
    return pl.pallas_call(
        _utt_rnn_kernel,
        out_shape=jax.ShapeDtypeStruct((batch, rnn_hidden), jnp.float32),
        in_specs=[
            pl.BlockSpec(memory_space=pl.ANY),   # bert_last_hidden: raw HBM ref
            vmem,                                # W_ih^T (bf16)
            vmem,                                # W_hh^T (f32)
            vmem,                                # bias   (f32)
            vmem,                                # init_hidden (f32)
        ],
        out_specs=vmem,
        scratch_shapes=[
            pltpu.VMEM((bt, bert_dim), jnp.float32),   # CLS rows landing buffer
            pltpu.SemaphoreType.DMA,
        ],
    )(bert_last_hidden, wih_t, whh_t, bias, init_hidden)


def _reference_forward(bert_last_hidden, num_turns, w_ih, w_hh, b_ih, b_hh,
                       init_hidden):
    """Pure-JAX f32 reference of the post-BERT part of the module."""
    bert_dim = bert_last_hidden.shape[-1]
    cls = bert_last_hidden[:, 0, :]
    batch = cls.shape[0] // num_turns
    sentence_rep = jnp.transpose(
        cls.reshape(batch, num_turns, bert_dim), (1, 0, 2))      # (T, B, 768)

    def step(h, x_t):
        return jnp.tanh(x_t @ w_ih.T + b_ih + h @ w_hh.T + b_hh), None

    h_last, _ = jax.lax.scan(step, init_hidden[0], sentence_rep)
    return h_last


if __name__ == "__main__":
    # Small, module-consistent shapes.
    batch = 2
    num_turns = 10     # module default
    max_len = 8        # padded token length from the tokenizer
    bert_dim = 768     # BERT hidden size (fixed by the module)
    rnn_hidden = 64    # module default

    key = jax.random.PRNGKey(0)
    k_bert, k_wih, k_whh, k_bih, k_bhh = jax.random.split(key, 5)

    # TODO(synk): real pretrained BERT encoder not reproduced; its last hidden
    # state is synthesized deterministically and treated as the kernel input.
    bert_last_hidden = jax.random.normal(
        k_bert, (batch * num_turns, max_len, bert_dim), jnp.float32) * 0.5

    # nn.RNN(768, rnn_hidden) parameter shapes, deterministic init.
    scale = 1.0 / jnp.sqrt(rnn_hidden)
    w_ih = jax.random.uniform(k_wih, (rnn_hidden, bert_dim), jnp.float32, -scale, scale)
    w_hh = jax.random.uniform(k_whh, (rnn_hidden, rnn_hidden), jnp.float32, -scale, scale)
    b_ih = jax.random.uniform(k_bih, (rnn_hidden,), jnp.float32, -scale, scale)
    b_hh = jax.random.uniform(k_bhh, (rnn_hidden,), jnp.float32, -scale, scale)

    # One-time parameter prep (transposes / casts / bias fold) -- NOT per call.
    wih_t, whh_t, bias = prepare_rnn_params(w_ih, w_hh, b_ih, b_hh)
    wih_t, whh_t, bias = jax.block_until_ready((wih_t, whh_t, bias))

    # init_hidden = zeros(1, batch, rnn_hidden), as in prepare_data().
    init_hidden = jnp.zeros((1, batch, rnn_hidden), jnp.float32)

    out = utterance_embedder_forward(
        bert_last_hidden, num_turns, wih_t, whh_t, bias, init_hidden)
    out = jax.block_until_ready(out)

    # Correctness check against the pure-f32 reference recurrence.  The kernel
    # runs the 768-length input projection with bf16 operands (f32 accumulate),
    # so allow a few e-3 of drift; the recurrence itself stays f32.
    ref = _reference_forward(
        bert_last_hidden, num_turns, w_ih, w_hh, b_ih, b_hh, init_hidden)
    assert out.shape == (batch, rnn_hidden)
    assert jnp.allclose(out, ref, atol=2e-2, rtol=2e-2), float(
        jnp.max(jnp.abs(out - ref)))

    print("KERNEL_OK")
</pallas_src>

<mosaic_0001>
module attributes {stable_mosaic.version = 11 : i64} {
  func.func @_utt_rnn_kernel(%arg0: memref<20x8x768xf32, #tpu.memory_space<any>>, %arg1: memref<768x64xbf16, #tpu.memory_space<vmem>>, %arg2: memref<64x64xf32, #tpu.memory_space<vmem>>, %arg3: memref<1x64xf32, #tpu.memory_space<vmem>>, %arg4: memref<1x2x64xf32, #tpu.memory_space<vmem>>, %arg5: memref<2x64xf32, #tpu.memory_space<vmem>>, %arg6: memref<20x768xf32, #tpu.memory_space<vmem>>, %arg7: memref<!tpu.dma_semaphore, #tpu.memory_space<semaphore_mem>>) attributes {dimension_semantics = [], scalar_prefetch = 0 : i64, scratch_operands = 2 : i64, tpu.core_type = #tpu.core_type<tc>} {
    %c0_i32 = arith.constant 0 : i32
    %c0_i32_0 = arith.constant 0 : i32
    %c0_i32_1 = arith.constant 0 : i32
    %0 = tpu.memref_slice %arg0[%c0_i32_0, %c0_i32, %c0_i32_1] : memref<20x8x768xf32, #tpu.memory_space<any>> -> memref<20x1x768xf32, #tpu.memory_space<any>>
    %1 = tpu.memref_squeeze %0 : memref<20x1x768xf32, #tpu.memory_space<any>> -> memref<20x768xf32, #tpu.memory_space<any>>
    tpu.enqueue_dma source(%1 : memref<20x768xf32, #tpu.memory_space<any>>) target(%arg6 : memref<20x768xf32, #tpu.memory_space<vmem>>) target_semaphore(%arg7 : memref<!tpu.dma_semaphore, #tpu.memory_space<semaphore_mem>>)
    %c0_i32_2 = arith.constant 0 : i32
    %c0_i32_3 = arith.constant 0 : i32
    %c0_i32_4 = arith.constant 0 : i32
    %2 = tpu.memref_slice %arg0[%c0_i32_3, %c0_i32_2, %c0_i32_4] : memref<20x8x768xf32, #tpu.memory_space<any>> -> memref<20x1x768xf32, #tpu.memory_space<any>>
    %3 = tpu.memref_squeeze %2 : memref<20x1x768xf32, #tpu.memory_space<any>> -> memref<20x768xf32, #tpu.memory_space<any>>
    tpu.wait_dma2 semaphore(%arg7 : memref<!tpu.dma_semaphore, #tpu.memory_space<semaphore_mem>>) src(%3 : memref<20x768xf32, #tpu.memory_space<any>>) dst(%arg6 : memref<20x768xf32, #tpu.memory_space<vmem>>)
    %c0 = arith.constant 0 : index
    %c0_5 = arith.constant 0 : index
    %4 = vector.load %arg6[%c0, %c0_5] : memref<20x768xf32, #tpu.memory_space<vmem>>, vector<20x768xf32>
    %5 = arith.truncf %4 : vector<20x768xf32> to vector<20x768xbf16>
    %c0_6 = arith.constant 0 : index
    %c0_7 = arith.constant 0 : index
    %6 = vector.load %arg1[%c0_6, %c0_7] : memref<768x64xbf16, #tpu.memory_space<vmem>>, vector<768x64xbf16>
    %cst = arith.constant dense<0.000000e+00> : vector<20x64xf32>
    %7 = tpu.matmul %5, %6, %cst {dimension_numbers = #tpu.dot_dimension_numbers<[1], [0], [0], [1], [0, 0, 1, 1], [], []>} : vector<20x768xbf16>, vector<768x64xbf16>, vector<20x64xf32> -> vector<20x64xf32>
    %c0_8 = arith.constant 0 : index
    %c0_9 = arith.constant 0 : index
    %8 = vector.load %arg3[%c0_8, %c0_9] : memref<1x64xf32, #tpu.memory_space<vmem>>, vector<1x64xf32>
    %9 = vector.broadcast %8 : vector<1x64xf32> to vector<20x64xf32>
    %10 = arith.addf %7, %9 : vector<20x64xf32>
    %c0_10 = arith.constant 0 : index
    %c0_11 = arith.constant 0 : index
    %11 = vector.load %arg2[%c0_10, %c0_11] : memref<64x64xf32, #tpu.memory_space<vmem>>, vector<64x64xf32>
    %c0_12 = arith.constant 0 : index
    %c0_13 = arith.constant 0 : index
    %c0_14 = arith.constant 0 : index
    %12 = vector.load %arg4[%c0_12, %c0_13, %c0_14] : memref<1x2x64xf32, #tpu.memory_space<vmem>>, vector<1x2x64xf32>
    %13 = vector.shape_cast %12 : vector<1x2x64xf32> to vector<2x64xf32>
    %14 = vector.extract_strided_slice %10 {offsets = [0, 0], sizes = [1, 64], strides = [1, 1]} : vector<20x64xf32> to vector<1x64xf32>
    %15 = vector.extract_strided_slice %10 {offsets = [10, 0], sizes = [1, 64], strides = [1, 1]} : vector<20x64xf32> to vector<1x64xf32>
    %16 = tpu.concatenate %14, %15 in 0 : vector<1x64xf32>, vector<1x64xf32> -> vector<2x64xf32>
    %cst_15 = arith.constant dense<0.000000e+00> : vector<2x64xf32>
    %17 = tpu.matmul %13, %11, %cst_15 {dimension_numbers = #tpu.dot_dimension_numbers<[1], [0], [0], [1], [0, 0, 1, 1], [], []>} : vector<2x64xf32>, vector<64x64xf32>, vector<2x64xf32> -> vector<2x64xf32>
    %18 = arith.addf %16, %17 : vector<2x64xf32>
    %19 = math.tanh %18 : vector<2x64xf32>
    %20 = vector.extract_strided_slice %10 {offsets = [1, 0], sizes = [1, 64], strides = [1, 1]} : vector<20x64xf32> to vector<1x64xf32>
    %21 = vector.extract_strided_slice %10 {offsets = [11, 0], sizes = [1, 64], strides = [1, 1]} : vector<20x64xf32> to vector<1x64xf32>
    %22 = tpu.concatenate %20, %21 in 0 : vector<1x64xf32>, vector<1x64xf32> -> vector<2x64xf32>
    %cst_16 = arith.constant dense<0.000000e+00> : vector<2x64xf32>
    %23 = tpu.matmul %19, %11, %cst_16 {dimension_numbers = #tpu.dot_dimension_numbers<[1], [0], [0], [1], [0, 0, 1, 1], [], []>} : vector<2x64xf32>, vector<64x64xf32>, vector<2x64xf32> -> vector<2x64xf32>
    %24 = arith.addf %22, %23 : vector<2x64xf32>
    %25 = math.tanh %24 : vector<2x64xf32>
    %26 = vector.extract_strided_slice %10 {offsets = [2, 0], sizes = [1, 64], strides = [1, 1]} : vector<20x64xf32> to vector<1x64xf32>
    %27 = vector.extract_strided_slice %10 {offsets = [12, 0], sizes = [1, 64], strides = [1, 1]} : vector<20x64xf32> to vector<1x64xf32>
    %28 = tpu.concatenate %26, %27 in 0 : vector<1x64xf32>, vector<1x64xf32> -> vector<2x64xf32>
    %cst_17 = arith.constant dense<0.000000e+00> : vector<2x64xf32>
    %29 = tpu.matmul %25, %11, %cst_17 {dimension_numbers = #tpu.dot_dimension_numbers<[1], [0], [0], [1], [0, 0, 1, 1], [], []>} : vector<2x64xf32>, vector<64x64xf32>, vector<2x64xf32> -> vector<2x64xf32>
    %30 = arith.addf %28, %29 : vector<2x64xf32>
    %31 = math.tanh %30 : vector<2x64xf32>
    %32 = vector.extract_strided_slice %10 {offsets = [3, 0], sizes = [1, 64], strides = [1, 1]} : vector<20x64xf32> to vector<1x64xf32>
    %33 = vector.extract_strided_slice %10 {offsets = [13, 0], sizes = [1, 64], strides = [1, 1]} : vector<20x64xf32> to vector<1x64xf32>
    %34 = tpu.concatenate %32, %33 in 0 : vector<1x64xf32>, vector<1x64xf32> -> vector<2x64xf32>
    %cst_18 = arith.constant dense<0.000000e+00> : vector<2x64xf32>
    %35 = tpu.matmul %31, %11, %cst_18 {dimension_numbers = #tpu.dot_dimension_numbers<[1], [0], [0], [1], [0, 0, 1, 1], [], []>} : vector<2x64xf32>, vector<64x64xf32>, vector<2x64xf32> -> vector<2x64xf32>
    %36 = arith.addf %34, %35 : vector<2x64xf32>
    %37 = math.tanh %36 : vector<2x64xf32>
    %38 = vector.extract_strided_slice %10 {offsets = [4, 0], sizes = [1, 64], strides = [1, 1]} : vector<20x64xf32> to vector<1x64xf32>
    %39 = vector.extract_strided_slice %10 {offsets = [14, 0], sizes = [1, 64], strides = [1, 1]} : vector<20x64xf32> to vector<1x64xf32>
    %40 = tpu.concatenate %38, %39 in 0 : vector<1x64xf32>, vector<1x64xf32> -> vector<2x64xf32>
    %cst_19 = arith.constant dense<0.000000e+00> : vector<2x64xf32>
    %41 = tpu.matmul %37, %11, %cst_19 {dimension_numbers = #tpu.dot_dimension_numbers<[1], [0], [0], [1], [0, 0, 1, 1], [], []>} : vector<2x64xf32>, vector<64x64xf32>, vector<2x64xf32> -> vector<2x64xf32>
    %42 = arith.addf %40, %41 : vector<2x64xf32>
    %43 = math.tanh %42 : vector<2x64xf32>
    %44 = vector.extract_strided_slice %10 {offsets = [5, 0], sizes = [1, 64], strides = [1, 1]} : vector<20x64xf32> to vector<1x64xf32>
    %45 = vector.extract_strided_slice %10 {offsets = [15, 0], sizes = [1, 64], strides = [1, 1]} : vector<20x64xf32> to vector<1x64xf32>
    %46 = tpu.concatenate %44, %45 in 0 : vector<1x64xf32>, vector<1x64xf32> -> vector<2x64xf32>
    %cst_20 = arith.constant dense<0.000000e+00> : vector<2x64xf32>
    %47 = tpu.matmul %43, %11, %cst_20 {dimension_numbers = #tpu.dot_dimension_numbers<[1], [0], [0], [1], [0, 0, 1, 1], [], []>} : vector<2x64xf32>, vector<64x64xf32>, vector<2x64xf32> -> vector<2x64xf32>
    %48 = arith.addf %46, %47 : vector<2x64xf32>
    %49 = math.tanh %48 : vector<2x64xf32>
    %50 = vector.extract_strided_slice %10 {offsets = [6, 0], sizes = [1, 64], strides = [1, 1]} : vector<20x64xf32> to vector<1x64xf32>
    %51 = vector.extract_strided_slice %10 {offsets = [16, 0], sizes = [1, 64], strides = [1, 1]} : vector<20x64xf32> to vector<1x64xf32>
    %52 = tpu.concatenate %50, %51 in 0 : vector<1x64xf32>, vector<1x64xf32> -> vector<2x64xf32>
    %cst_21 = arith.constant dense<0.000000e+00> : vector<2x64xf32>
    %53 = tpu.matmul %49, %11, %cst_21 {dimension_numbers = #tpu.dot_dimension_numbers<[1], [0], [0], [1], [0, 0, 1, 1], [], []>} : vector<2x64xf32>, vector<64x64xf32>, vector<2x64xf32> -> vector<2x64xf32>
    %54 = arith.addf %52, %53 : vector<2x64xf32>
    %55 = math.tanh %54 : vector<2x64xf32>
    %56 = vector.extract_strided_slice %10 {offsets = [7, 0], sizes = [1, 64], strides = [1, 1]} : vector<20x64xf32> to vector<1x64xf32>
    %57 = vector.extract_strided_slice %10 {offsets = [17, 0], sizes = [1, 64], strides = [1, 1]} : vector<20x64xf32> to vector<1x64xf32>
    %58 = tpu.concatenate %56, %57 in 0 : vector<1x64xf32>, vector<1x64xf32> -> vector<2x64xf32>
    %cst_22 = arith.constant dense<0.000000e+00> : vector<2x64xf32>
    %59 = tpu.matmul %55, %11, %cst_22 {dimension_numbers = #tpu.dot_dimension_numbers<[1], [0], [0], [1], [0, 0, 1, 1], [], []>} : vector<2x64xf32>, vector<64x64xf32>, vector<2x64xf32> -> vector<2x64xf32>
    %60 = arith.addf %58, %59 : vector<2x64xf32>
    %61 = math.tanh %60 : vector<2x64xf32>
    %62 = vector.extract_strided_slice %10 {offsets = [8, 0], sizes = [1, 64], strides = [1, 1]} : vector<20x64xf32> to vector<1x64xf32>
    %63 = vector.extract_strided_slice %10 {offsets = [18, 0], sizes = [1, 64], strides = [1, 1]} : vector<20x64xf32> to vector<1x64xf32>
    %64 = tpu.concatenate %62, %63 in 0 : vector<1x64xf32>, vector<1x64xf32> -> vector<2x64xf32>
    %cst_23 = arith.constant dense<0.000000e+00> : vector<2x64xf32>
    %65 = tpu.matmul %61, %11, %cst_23 {dimension_numbers = #tpu.dot_dimension_numbers<[1], [0], [0], [1], [0, 0, 1, 1], [], []>} : vector<2x64xf32>, vector<64x64xf32>, vector<2x64xf32> -> vector<2x64xf32>
    %66 = arith.addf %64, %65 : vector<2x64xf32>
    %67 = math.tanh %66 : vector<2x64xf32>
    %68 = vector.extract_strided_slice %10 {offsets = [9, 0], sizes = [1, 64], strides = [1, 1]} : vector<20x64xf32> to vector<1x64xf32>
    %69 = vector.extract_strided_slice %10 {offsets = [19, 0], sizes = [1, 64], strides = [1, 1]} : vector<20x64xf32> to vector<1x64xf32>
    %70 = tpu.concatenate %68, %69 in 0 : vector<1x64xf32>, vector<1x64xf32> -> vector<2x64xf32>
    %cst_24 = arith.constant dense<0.000000e+00> : vector<2x64xf32>
    %71 = tpu.matmul %67, %11, %cst_24 {dimension_numbers = #tpu.dot_dimension_numbers<[1], [0], [0], [1], [0, 0, 1, 1], [], []>} : vector<2x64xf32>, vector<64x64xf32>, vector<2x64xf32> -> vector<2x64xf32>
    %72 = arith.addf %70, %71 : vector<2x64xf32>
    %73 = math.tanh %72 : vector<2x64xf32>
    %c0_25 = arith.constant 0 : index
    %c0_26 = arith.constant 0 : index
    %74 = vector.load %arg5[%c0_25, %c0_26] : memref<2x64xf32, #tpu.memory_space<vmem>>, vector<2x64xf32>
    tpu.vector_store %arg5[%c0_25, %c0_26], %73 {strides = array<i32>} : memref<2x64xf32, #tpu.memory_space<vmem>>, vector<2x64xf32>,
    return
  }
}

</mosaic_0001>

<bundles_post_ra>
// kernel: tpu_custom_call.1
= control target key start
LH: loop header
LB: loop body
LE: loop exit
PB: predicated region body
PF: predicated region fallthrough
CT: control target
= control target key end

     0   :  { %10 = vsyncpa [#allocation5], 0  ;;  %s23_s18 = sld [smem:[#allocation0]]   ;;  %s1273_s22 = smov [#allocation2]   ;;  %s1620_s0 = inlined_call_operand.hbm [shape: f32[20,8,768], index: 0, kind: input, shape index: {}]   ;;  %s1621_s1 = inlined_call_operand.vmem [shape: bf16[768,64], index: 1, kind: input, shape index: {}]   ;;  %s1622_s2 = inlined_call_operand.vmem [shape: f32[64,64], index: 2, kind: input, shape index: {}]   ;;  %s1623_s3 = inlined_call_operand.vmem [shape: f32[1,64], index: 3, kind: input, shape index: {}]   ;;  %s1624_s4 = inlined_call_operand.vmem [shape: f32[1,2,64], index: 4, kind: input, shape index: {}]   ;;  %s1625_s5 = inlined_call_operand.hbm [shape: f32[2,64], index: 5, kind: output, shape index: {}]  }
   0x1   :  { %s31_s21 = sshll.u32 %s1620_s0, 4  ;;  %s33_s23 = sshll.u32 %s1273_s22, 4  ;;  %s32_s21 = int_to_ptr.hbm [resolvable:$true] %s31_s21  ;;  %s34_s23 = int_to_ptr.vmem [resolvable:$true] %s33_s23 }
   0x2   :  { %s1274_s24 = smov 6144   ;;  %s1275_s25 = smov 768  }
   0x3   :  { %42 = sst [smem:[#allocation7]] %s1274_s24  ;;  %s1276_s27 = smov 6  }
   0x4   :  { %44 = sst [smem:[#allocation7 + $0x1]] %s1275_s25  ;;  %s1277_s29 = smov 128  }
   0x5   :  { %46 = sst [smem:[#allocation7 + $0x2]] %s1276_s27  ;;  %s1278_s30 = smov 8  }
   0x6   :  { %s955_s26 = sshll.u32 %s23_s18, 26  ;;  %48 = sst [smem:[#allocation7 + $0x3]] %s1277_s29 }
   0x7   :  { %s1320_s28 = sadd.s32 134217728, %s955_s26  ;;  %50 = sst [smem:[#allocation7 + $0x4]] %s1277_s29 }
   0x8   :  { %52 = sst [smem:[#allocation7 + $0x5]] %s1278_s30  ;;  %s1279_s6 = smov 16  }
   0x9   :  { %54 = sst [smem:[#allocation7 + $0x6]] %s1275_s25  ;;  %s1280_s7 = smov 1  }
   0xa   :  { %56 = sst [smem:[#allocation7 + $0x7]] %s1279_s6  ;;  %s1281_s8 = smov [#allocation3]  }
   0xb   :  { %58 = sst [smem:[#allocation7 + $0x8]] %s1280_s7  ;;  %s1282_s9 = smov [#allocation6]  }
   0xc   :  { %60 = dma.general %s32_s21, 1536, %s34_s23, %s1281_s8, %s1282_s9, [#allocation7], %s1320_s28, 0  }
   0xd   :  { %83 = sst [smem:[#allocation9]] %s1277_s29  ;;  %s61_s12 = scalar_lea.hbm %s1620_s0, 768 }
   0xe   :  { %85 = sst [smem:[#allocation9 + $0x1]] %s1277_s29  ;;  %s1283_s13 = smov 4  }
   0xf   :  { %87 = sst [smem:[#allocation9 + $0x2]] %s1283_s13  ;;  %s74_s14 = sshll.u32 %s61_s12, 4  ;;  %s75_s14 = int_to_ptr.hbm [resolvable:$true] %s74_s14 }
  0x10   :  { %89 = sst [smem:[#allocation9 + $0x3]] %s1275_s25  ;;  %s1284_s15 = smov [#allocation2 + $0x60]  }
  0x11   :  { %91 = sst [smem:[#allocation9 + $0x4]] %s1279_s6  ;;  %s76_s16 = sshll.u32 %s1284_s15, 4  ;;  %s77_s16 = int_to_ptr.vmem [resolvable:$true] %s76_s16 }
  0x12   :  { %93 = sst [smem:[#allocation9 + $0x5]] %s1280_s7  ;;  %s1285_s17 = smov [#allocation8]  }
  0x13   :  { %95 = dma.general %s75_s14, 384, %s77_s16, %s1281_s8, %s1285_s17, [#allocation9], %s1320_s28, 0  }
  0x14   :  { %1269 = dma.done.wait [#allocation3], 1920 }
  0x15   :  { %1270 = vsyncadd [#allocation3], 4294965376  ;;  %v1169_v0 = vld [vmem:[%s1621_s1 + $0x38] sm:$0xff]  ;;  %v1168_v4 = vld [vmem:[%s1621_s1 + $0x30] sm:$0xff]  ;;  %vm639_vm0 = vcmask 523264   ;;  %vm637_vm1 = vcmask 1040384  }
  0x16   :  { %v1177_v1 = vld [vmem:[%s1621_s1 + $0x78] sm:$0xff]  ;;  %517 = vmatpush.bf16.msra.mxu0 %v1169_v0  ;;  %v1176_v5 = vld [vmem:[%s1621_s1 + $0x70] sm:$0xff]  ;;  %v1167_v8 = vld [vmem:[%s1621_s1 + $0x28] sm:$0xff]  ;;  %s940_s29 = sshll.u32 %s1625_s5, 4  ;;  %vm931_vm2 = vcmask 517120   ;;  %s941_s29 = int_to_ptr.hbm [resolvable:$true] %s940_s29 }
  0x17   :  { %v1185_v2 = vld [vmem:[%s1621_s1 + $0xb8] sm:$0xff]  ;;  %535 = vmatpush.bf16.msra.mxu1 %v1177_v1  ;;  %v1184_v6 = vld [vmem:[%s1621_s1 + $0xb0] sm:$0xff]  ;;  %v1175_v9 = vld [vmem:[%s1621_s1 + $0x68] sm:$0xff] }
  0x18   :  { %v1193_v3 = vld [vmem:[%s1621_s1 + $0xf8] sm:$0xff]  ;;  %553 = vmatpush.bf16.msra.mxu2 %v1185_v2  ;;  %v1192_v7 = vld [vmem:[%s1621_s1 + $0xf0] sm:$0xff]  ;;  %v1183_v10 = vld [vmem:[%s1621_s1 + $0xa8] sm:$0xff] }
  0x19   :  { %571 = vmatpush.bf16.msra.mxu3 %v1193_v3  ;;  %v1191_v11 = vld [vmem:[%s1621_s1 + $0xe8] sm:$0xff]  ;;  %v1166_v12 = vld [vmem:[%s1621_s1 + $0x20] sm:$0xff]  ;;  %v1165_v16 = vld [vmem:[%s1621_s1 + $0x18] sm:$0xff] }
  0x1a   :  { %518 = vmatpush.bf16.msra.mxu0 %v1168_v4  ;;  %v1174_v13 = vld [vmem:[%s1621_s1 + $0x60] sm:$0xff]  ;;  %v1173_v17 = vld [vmem:[%s1621_s1 + $0x58] sm:$0xff]  ;;  %v1164_v20 = vld [vmem:[%s1621_s1 + $0x10] sm:$0xff] }
  0x1b   :  { %536 = vmatpush.bf16.msra.mxu1 %v1176_v5  ;;  %v1182_v14 = vld [vmem:[%s1621_s1 + $0xa0] sm:$0xff]  ;;  %v1181_v18 = vld [vmem:[%s1621_s1 + $0x98] sm:$0xff]  ;;  %v1172_v21 = vld [vmem:[%s1621_s1 + $0x50] sm:$0xff] }
  0x1c   :  { %554 = vmatpush.bf16.msra.mxu2 %v1184_v6  ;;  %v1190_v15 = vld [vmem:[%s1621_s1 + $0xe0] sm:$0xff]  ;;  %v1189_v19 = vld [vmem:[%s1621_s1 + $0xd8] sm:$0xff]  ;;  %v1180_v22 = vld [vmem:[%s1621_s1 + $0x90] sm:$0xff] }
  0x1d   :  { %572 = vmatpush.bf16.msra.mxu3 %v1192_v7  ;;  %v1188_v23 = vld [vmem:[%s1621_s1 + $0xd0] sm:$0xff]  ;;  %v1163_v24 = vld [vmem:[%s1621_s1 + $0x8] sm:$0xff]  ;;  %v1162_v28 = vld [vmem:[%s1621_s1] sm:$0xff] }
  0x1e   :  { %519 = vmatpush.bf16.msra.mxu0 %v1167_v8  ;;  %v1171_v25 = vld [vmem:[%s1621_s1 + $0x48] sm:$0xff]  ;;  %v1170_v29 = vld [vmem:[%s1621_s1 + $0x40] sm:$0xff]  ;;  %v105_v33 = vld [vmem:[#allocation2 + $0x30] sm:$0xff] }
  0x1f   :  { %537 = vmatpush.bf16.msra.mxu1 %v1175_v9  ;;  %v1179_v26 = vld [vmem:[%s1621_s1 + $0x88] sm:$0xff]  ;;  %v1178_v30 = vld [vmem:[%s1621_s1 + $0x80] sm:$0xff]  ;;  %v106_v35 = vld [vmem:[#allocation2 + $0x38] sm:$0xff] }
  0x20   :  { %555 = vmatpush.bf16.msra.mxu2 %v1183_v10  ;;  %v1187_v27 = vld [vmem:[%s1621_s1 + $0xc8] sm:$0xff]  ;;  %v1186_v31 = vld [vmem:[%s1621_s1 + $0xc0] sm:$0xff]  ;;  %v101_v36 = vld [vmem:[#allocation2 + $0x10] sm:$0xff] }
  0x21   :  { %573 = vmatpush.bf16.msra.mxu3 %v1191_v11  ;;  %v99_v32 = vld [vmem:[#allocation2] sm:$0xff]  ;;  %v100_v34 = vld [vmem:[#allocation2 + $0x8] sm:$0xff]  ;;  %v102_v38 = vld [vmem:[#allocation2 + $0x18] sm:$0xff] }
  0x22   :  { %520 = vmatpush.bf16.msra.mxu0 %v1166_v12  ;;  %v107_v37 = vld [vmem:[#allocation2 + $0x40] sm:$0xff]  ;;  %v108_v39 = vld [vmem:[#allocation2 + $0x48] sm:$0xff]  ;;  %v1201_v40 = vld [vmem:[%s1621_s1 + $0x138] sm:$0xff]  ;;  %v117_v42 = vpack.c.bf16 %v105_v33, %v99_v32  ;;  %v118_v43 = vpack.c.bf16 %v106_v35, %v100_v34 }
  0x23   :  { %538 = vmatpush.bf16.msra.mxu1 %v1174_v13  ;;  %v1209_v41 = vld [vmem:[%s1621_s1 + $0x178] sm:$0xff]  ;;  %v119_v44 = vpack.c.bf16 %v107_v37, %v101_v36  ;;  %v120_v45 = vpack.c.bf16 %v108_v39, %v102_v38  ;;  %v1200_v46 = vld [vmem:[%s1621_s1 + $0x130] sm:$0xff]  ;;  %v1199_v50 = vld [vmem:[%s1621_s1 + $0x128] sm:$0xff] }
  0x24   :  { %556 = vmatpush.bf16.msra.mxu2 %v1182_v14  ;;  %v1208_v47 = vld [vmem:[%s1621_s1 + $0x170] sm:$0xff]  ;;  %v1438_v48 = vld [vmem:[%s1622_s2 + $0x38] sm:$0xff]  ;;  %v1207_v51 = vld [vmem:[%s1621_s1 + $0x168] sm:$0xff] }
  0x25   :  { %574 = vmatpush.bf16.msra.mxu3 %v1190_v15  ;;  %v1443_v49 = vld [vmem:[%s1622_s2 + $0x30] sm:$0xff]  ;;  %v1456_v52 = vld [vmem:[%s1622_s2 + $0x28] sm:$0xff]  ;;  %v1463_v53 = vld [vmem:[%s1622_s2 + $0x20] sm:$0xff] }
  0x26   :  { %521 = vmatpush.bf16.msra.mxu0 %v1165_v16  ;;  %v1198_v54 = vld [vmem:[%s1621_s1 + $0x120] sm:$0xff]  ;;  %v1476_v56 = vld [vmem:[%s1622_s2 + $0x18] sm:$0xff]  ;;  %v112_v58 = vld [vmem:[#allocation2 + $0x68] sm:$0xf] }
  0x27   :  { %539 = vmatpush.bf16.msra.mxu1 %v1173_v17  ;;  %v1206_v55 = vld [vmem:[%s1621_s1 + $0x160] sm:$0xff]  ;;  %v1483_v59 = vld [vmem:[%s1622_s2 + $0x10] sm:$0xff]  ;;  %v114_v61 = vld [vmem:[#allocation2 + $0x78] sm:$0xf]  ;;  %v124_v2 = vpack.c.bf16 %v112_v58, %v112_v58 }
  0x28   :  { %557 = vmatpush.bf16.msra.mxu2 %v1181_v18  ;;  %v111_v57 = vld [vmem:[#allocation2 + $0x60] sm:$0xf]  ;;  %v113_v60 = vld [vmem:[#allocation2 + $0x70] sm:$0xf]  ;;  %v1197_v62 = vld [vmem:[%s1621_s1 + $0x118] sm:$0xff]  ;;  %v126_v4 = vpack.c.bf16 %v114_v61, %v114_v61 }
  0x29   :  { %575 = vmatpush.bf16.msra.mxu3 %v1189_v19  ;;  %v1205_v63 = vld [vmem:[%s1621_s1 + $0x158] sm:$0xff]  ;;  %v1496_v0 = vld [vmem:[%s1622_s2 + $0x8] sm:$0xff]  ;;  %v123_v1 = vpack.c.bf16 %v111_v57, %v111_v57  ;;  %v125_v3 = vpack.c.bf16 %v113_v60, %v113_v60  ;;  %v1196_v5 = vld [vmem:[%s1621_s1 + $0x110] sm:$0xff] }
  0x2a   :  { %522 = vmatpush.bf16.msra.mxu0 %v1164_v20  ;;  %v1204_v6 = vld [vmem:[%s1621_s1 + $0x150] sm:$0xff]  ;;  %v1511_v7 = vld [vmem:[%s1622_s2] sm:$0xff]  ;;  %v1195_v8 = vld [vmem:[%s1621_s1 + $0x108] sm:$0xff] }
  0x2b   :  { %540 = vmatpush.bf16.msra.mxu1 %v1172_v21  ;;  %v1203_v9 = vld [vmem:[%s1621_s1 + $0x148] sm:$0xff]  ;;  %v1194_v10 = vld [vmem:[%s1621_s1 + $0x100] sm:$0xff]  ;;  %v109_v13 = vld [vmem:[#allocation2 + $0x50] sm:$0xff] }
  0x2c   :  { %558 = vmatpush.bf16.msra.mxu2 %v1180_v22  ;;  %v1202_v11 = vld [vmem:[%s1621_s1 + $0x140] sm:$0xff]  ;;  %v104_v14 = vld [vmem:[#allocation2 + $0x28] sm:$0xff]  ;;  %v110_v15 = vld [vmem:[#allocation2 + $0x58] sm:$0xff] }
  0x2d   :  { %576 = vmatpush.bf16.msra.mxu3 %v1188_v23  ;;  %v103_v12 = vld [vmem:[#allocation2 + $0x20] sm:$0xff]  ;;  %v122_v17 = vpack.c.bf16 %v110_v15, %v104_v14  ;;  %v116_v20 = vld [vmem:[#allocation2 + $0x88] sm:$0xf] }
  0x2e   :  { %523 = vmatpush.bf16.msra.mxu0 %v1163_v24  ;;  %v121_v16 = vpack.c.bf16 %v109_v13, %v103_v12  ;;  %v633_v18 = vld [vmem:[%s1624_s4] sm:$0x3]  ;;  %v128_v22 = vpack.c.bf16 %v116_v20, %v116_v20 }
  0x2f   :  { %541 = vmatpush.bf16.msra.mxu1 %v1171_v25  ;;  %v115_v19 = vld [vmem:[#allocation2 + $0x80] sm:$0xf] }
  0x30   :  { %559 = vmatpush.bf16.msra.mxu2 %v1179_v26  ;;  %v127_v21 = vpack.c.bf16 %v115_v19, %v115_v19 }
  0x31   :  { %577 = vmatpush.bf16.msra.mxu3 %v1187_v27 }
  0x32   :  { %524 = vmatpush.bf16.msra.mxu0 %v1162_v28 }
  0x33   :  { %542 = vmatpush.bf16.msra.mxu1 %v1170_v29  ;;  %v1224_v29 = vld [vmem:[%s1623_s3] ss:$0 sm:$0xff]  ;;  %s1286_s3 = smov [#allocation4]  }
  0x34   :  { %560 = vmatpush.bf16.msra.mxu2 %v1178_v30  ;;  %s938_s26 = sshll.u32 %s1286_s3, 4  ;;  %s939_s26 = int_to_ptr.vmem [resolvable:$true] %s938_s26 }
  0x35   :  { %578 = vmatpush.bf16.msra.mxu3 %v1186_v31  ;;  %525 = vmatmul.bf16.vlgmr.msra.gmra.mxu0 %v117_v42 }
  0x36   :  { %589 = vmatpush.bf16.msrb.mxu0 %v1201_v40  ;;  %543 = vmatmul.bf16.vlgmr.msra.gmra.mxu1 %v118_v43 }
  0x37   :  { %607 = vmatpush.bf16.msrb.mxu1 %v1209_v41  ;;  %561 = vmatmul.bf16.vlgmr.msra.gmra.mxu2 %v119_v44 }
  0x38   :  { %579 = vmatmul.bf16.vlgmr.msra.gmra.mxu3 %v120_v45  ;;  %651 = vmatpush.msrb.mxu2 %v1438_v48 }
  0x39   :  { %682 = vmatpush.msrb.mxu3 %v1438_v48 }
  0x3a   :  { %590 = vmatpush.bf16.msrb.mxu0 %v1200_v46  ;;  %652 = vmatpush.msrb.mxu2 %v1443_v49 }
  0x3b   :  { %608 = vmatpush.bf16.msrb.mxu1 %v1208_v47  ;;  %683 = vmatpush.msrb.mxu3 %v1443_v49 }
  0x3c   :  { %653 = vmatpush.msrb.mxu2 %v1456_v52 }
  0x3d   :  { %684 = vmatpush.msrb.mxu3 %v1456_v52 }
  0x3e   :  { %591 = vmatpush.bf16.msrb.mxu0 %v1199_v50  ;;  %654 = vmatpush.msrb.mxu2 %v1463_v53 }
  0x3f   :  { %609 = vmatpush.bf16.msrb.mxu1 %v1207_v51  ;;  %685 = vmatpush.msrb.mxu3 %v1463_v53 }
  0x40   :  { %655 = vmatpush.msrb.mxu2 %v1476_v56 }
  0x41   :  { %686 = vmatpush.msrb.mxu3 %v1476_v56 }
  0x42   :  { %592 = vmatpush.bf16.msrb.mxu0 %v1198_v54  ;;  %656 = vmatpush.msrb.mxu2 %v1483_v59 }
  0x43   :  { %610 = vmatpush.bf16.msrb.mxu1 %v1206_v55  ;;  %687 = vmatpush.msrb.mxu3 %v1483_v59 }
  0x44   :  { %657 = vmatpush.msrb.mxu2 %v1496_v0 }
  0x45   :  { %688 = vmatpush.msrb.mxu3 %v1496_v0  ;;  %530 = vmatmul.bf16.gmra.mxu0 %v123_v1 }
  0x46   :  { %593 = vmatpush.bf16.msrb.mxu0 %v1197_v62  ;;  %548 = vmatmul.bf16.gmra.mxu1 %v124_v2 }
  0x47   :  { %611 = vmatpush.bf16.msrb.mxu1 %v1205_v63  ;;  %566 = vmatmul.bf16.gmra.mxu2 %v125_v3 }
  0x48   :  { %584 = vmatmul.bf16.gmra.mxu3 %v126_v4  ;;  %658 = vmatpush.msrb.mxu2 %v1511_v7 }
  0x49   :  { %689 = vmatpush.msrb.mxu3 %v1511_v7 }
  0x4a   :  { %594 = vmatpush.bf16.msrb.mxu0 %v1196_v5  ;;  %712 = vmatpush.msra.mxu2 %v1438_v48 }
  0x4b   :  { %612 = vmatpush.bf16.msrb.mxu1 %v1204_v6  ;;  %742 = vmatpush.msra.mxu3 %v1438_v48 }
  0x4c   :  { %713 = vmatpush.msra.mxu2 %v1443_v49 }
  0x4d   :  { %743 = vmatpush.msra.mxu3 %v1443_v49 }
  0x4e   :  { %595 = vmatpush.bf16.msrb.mxu0 %v1195_v8  ;;  %714 = vmatpush.msra.mxu2 %v1456_v52 }
  0x4f   :  { %613 = vmatpush.bf16.msrb.mxu1 %v1203_v9  ;;  %744 = vmatpush.msra.mxu3 %v1456_v52 }
  0x50   :  { %715 = vmatpush.msra.mxu2 %v1463_v53 }
  0x51   :  { %745 = vmatpush.msra.mxu3 %v1463_v53 }
  0x52   :  { %596 = vmatpush.bf16.msrb.mxu0 %v1194_v10  ;;  %716 = vmatpush.msra.mxu2 %v1476_v56 }
  0x53   :  { %614 = vmatpush.bf16.msrb.mxu1 %v1202_v11  ;;  %746 = vmatpush.msra.mxu3 %v1476_v56 }
  0x54   :  { %717 = vmatpush.msra.mxu2 %v1483_v59 }
  0x55   :  { %747 = vmatpush.msra.mxu3 %v1483_v59  ;;  %597 = vmatmul.bf16.vlgmr.msrb.gmra.mxu0 %v121_v16 }
  0x56   :  { %772 = vmatpush.msra.mxu0 %v1438_v48  ;;  %615 = vmatmul.bf16.vlgmr.msrb.gmra.mxu1 %v122_v17 }
  0x57   :  { %802 = vmatpush.msra.mxu1 %v1438_v48  ;;  %1151 = vmatmul.msk.f32.vlgmr.msrb.gmra.mxu2 %vm639_vm0, %v633_v18 }
  0x58   :  { %773 = vmatpush.msra.mxu0 %v1443_v49  ;;  %748 = vmatpush.msra.mxu3 %v1496_v0 }
  0x59   :  { %803 = vmatpush.msra.mxu1 %v1443_v49  ;;  %718 = vmatpush.msra.mxu2 %v1496_v0 }
  0x5a   :  { %774 = vmatpush.msra.mxu0 %v1456_v52  ;;  %749 = vmatpush.msra.mxu3 %v1511_v7 }
  0x5b   :  { %804 = vmatpush.msra.mxu1 %v1456_v52  ;;  %719 = vmatpush.msra.mxu2 %v1511_v7 }
  0x5c   :  { %775 = vmatpush.msra.mxu0 %v1463_v53 }
  0x5d   :  { %805 = vmatpush.msra.mxu1 %v1463_v53  ;;  %833 = vmatpush.msrb.mxu2 %v1438_v48 }
  0x5e   :  { %776 = vmatpush.msra.mxu0 %v1476_v56 }
  0x5f   :  { %806 = vmatpush.msra.mxu1 %v1476_v56  ;;  %834 = vmatpush.msrb.mxu2 %v1443_v49 }
  0x60   :  { %777 = vmatpush.msra.mxu0 %v1483_v59 }
  0x61   :  { %807 = vmatpush.msra.mxu1 %v1483_v59  ;;  %835 = vmatpush.msrb.mxu2 %v1456_v52 }
  0x62   :  { %778 = vmatpush.msra.mxu0 %v1496_v0 }
  0x63   :  { %808 = vmatpush.msra.mxu1 %v1496_v0  ;;  %836 = vmatpush.msrb.mxu2 %v1463_v53 }
  0x64   :  { %779 = vmatpush.msra.mxu0 %v1511_v7 }
  0x65   :  { %809 = vmatpush.msra.mxu1 %v1511_v7  ;;  %837 = vmatpush.msrb.mxu2 %v1476_v56 }
  0x66   :  { %889 = vmatpush.msrb.mxu0 %v1438_v48  ;;  %620 = vmatmul.bf16.gmra.mxu1 %v128_v22 }
  0x67   :  { %917 = vmatpush.msrb.mxu1 %v1438_v48  ;;  %838 = vmatpush.msrb.mxu2 %v1483_v59 }
  0x68   :  { %602 = vmatmul.bf16.gmra.mxu0 %v127_v21 }
  0x69   :  { %839 = vmatpush.msrb.mxu2 %v1496_v0  ;;  %890 = vmatpush.msrb.mxu0 %v1443_v49 }
  0x6a   :  { %918 = vmatpush.msrb.mxu1 %v1443_v49 }
  0x6b   :  { %840 = vmatpush.msrb.mxu2 %v1511_v7  ;;  %891 = vmatpush.msrb.mxu0 %v1456_v52 }
  0x6c   :  { %919 = vmatpush.msrb.mxu1 %v1456_v52 }
  0x6d   :  { %892 = vmatpush.msrb.mxu0 %v1463_v53 }
  0x6e   :  { %920 = vmatpush.msrb.mxu1 %v1463_v53 }
  0x6f   :  { %893 = vmatpush.msrb.mxu0 %v1476_v56 }
  0x70   :  { %921 = vmatpush.msrb.mxu1 %v1476_v56 }
  0x71   :  { %894 = vmatpush.msrb.mxu0 %v1483_v59 }
  0x72   :  { %922 = vmatpush.msrb.mxu1 %v1483_v59 }
  0x73   :  { %895 = vmatpush.msrb.mxu0 %v1496_v0 }
  0x74   :  { %923 = vmatpush.msrb.mxu1 %v1496_v0 }
  0x75   :  { %896 = vmatpush.msrb.mxu0 %v1511_v7 }
  0x76   :  { %924 = vmatpush.msrb.mxu1 %v1511_v7 }
  0xb2   :  { %v526_v23 = vpop.f32.mrf.mxu0 }
  0xb3   :  { %v544_v24 = vpop.f32.mrf.mxu1  ;;  %v527_v38 = vadd.f32 %v1224_v29, %v526_v23 }
  0xb5   :  { %v545_v43 = vadd.f32 %v544_v24, %v527_v38 }
  0xba   :  { %v562_v25 = vpop.f32.mrf.mxu2  ;;  %v528_v27 = vpop.f32.mrf.mxu0 }
  0xbb   :  { %v580_v26 = vpop.f32.mrf.mxu3  ;;  %v546_v28 = vpop.f32.mrf.mxu1  ;;  %v529_v44 = vadd.f32 %v1224_v29, %v528_v27  ;;  %v563_v45 = vadd.f32 %v562_v25, %v545_v43 }
  0xbd   :  { %v547_v54 = vadd.f32 %v546_v28, %v529_v44  ;;  %v581_v55 = vadd.f32 %v580_v26, %v563_v45 }
  0xc2   :  { %v564_v30 = vpop.f32.mrf.mxu2  ;;  %v531_v32 = vpop.f32.mrf.mxu0 }
  0xc3   :  { %v582_v31 = vpop.f32.mrf.mxu3  ;;  %v549_v33 = vpop.f32.mrf.mxu1  ;;  %v532_v34 = vadd.f32 %v1224_v29, %v531_v32  ;;  %v565_v57 = vadd.f32 %v564_v30, %v547_v54 }
  0xc5   :  { %v550_v35 = vadd.f32 %v549_v33, %v532_v34  ;;  %v583_v60 = vadd.f32 %v582_v31, %v565_v57 }
  0xca   :  { %v567_v36 = vpop.f32.mrf.mxu2  ;;  %v533_v40 = vpop.f32.mrf.mxu0 }
  0xcb   :  { %v585_v37 = vpop.f32.mrf.mxu3  ;;  %v568_v39 = vadd.f32 %v567_v36, %v550_v35  ;;  %v551_v41 = vpop.f32.mrf.mxu1 }
  0xcd   :  { %v586_v42 = vadd.f32 %v585_v37, %v568_v39 }
  0xd2   :  { %v569_v46 = vpop.f32.mrf.mxu2  ;;  %v598_v50 = vpop.f32.mrf.mxu0 }
  0xd3   :  { %v587_v47 = vpop.f32.mrf.mxu3  ;;  %v616_v51 = vpop.f32.mrf.mxu1  ;;  %v599_v58 = vadd.f32 %v598_v50, %v581_v55 }
  0xd5   :  { %v617_v61 = vadd.f32 %v616_v51, %v599_v58 }
  0xd7   :  { %v666_v3 = vrot.slane %v617_v61, 1  ;;  %v696_v4 = vrot.slane %v617_v61, 2  ;;  %v726_v5 = vrot.slane %v617_v61, 3  ;;  %v756_v12 = vrot.slane %v617_v61, 4 }
  0xd8   :  { %v786_v14 = vrot.slane %v617_v61, 5  ;;  %v847_v27 = vrot.slane %v617_v61, 7  ;;  %v816_v28 = vrot.slane %v617_v61, 6 }
  0xda   :  { %v600_v62 = vpop.f32.mrf.mxu0  ;;  %v660_v8 = vpop.f32.mrf.mxu2 }
  0xdb   :  { %v618_v63 = vpop.f32.mrf.mxu1  ;;  %v601_v1 = vadd.f32 %v600_v62, %v583_v60 }
  0xdd   :  { %v619_v2 = vadd.f32 %v618_v63, %v601_v1 }
  0xdf   :  { %v635_v6 = vrot.slane %v619_v2, 1  ;;  %v668_v9 = vrot.slane %v619_v2, 2  ;;  %v698_v10 = vrot.slane %v619_v2, 3  ;;  %v728_v11 = vrot.slane %v619_v2, 4 }
  0xe0   :  { %v758_v13 = vrot.slane %v619_v2, 5  ;;  %v788_v15 = vrot.slane %v619_v2, 6 }
  0xe1   :  { %v638_v16 = vsel %vm637_vm1, %v617_v61, %v635_v6  ;;  %v670_v17 = vsel %vm637_vm1, %v666_v3, %v668_v9  ;;  %v700_v18 = vsel %vm637_vm1, %v696_v4, %v698_v10  ;;  %v730_v19 = vsel %vm637_vm1, %v726_v5, %v728_v11 }
  0xe2   :  { %v663_v20 = vadd.f32 %v660_v8, %v638_v16  ;;  %v760_v23 = vsel %vm637_vm1, %v756_v12, %v758_v13  ;;  %v790_v24 = vsel %vm637_vm1, %v786_v14, %v788_v15 }
  0xe3   :  { %v621_v22 = vpop.f32.mrf.mxu1 }
  0xe4   :  { %1225 = vtanh.f32 %v663_v20 }
  0xe5   :  { %v603_v21 = vpop.f32.mrf.mxu0 }
  0xe6   :  { %v604_v25 = vadd.f32 %v603_v21, %v586_v42 }
  0xe8   :  { %v622_v26 = vadd.f32 %v621_v22, %v604_v25 }
  0xea   :  { %v819_v29 = vrot.slane %v622_v26, 7  ;;  %v849_v30 = vsel %vm637_vm1, %v847_v27, %v622_v26  ;;  %v875_v31 = vrot.slane %v622_v26, 1  ;;  %v903_v32 = vrot.slane %v622_v26, 2  ;;  %v1226_v36 = vpop.eup %1225 }
  0xeb   :  { %v623_v38 = vpop.f32.mrf.mxu1  ;;  %1152 = vmatmul.msk.f32.vlgmr.msrb.gmra.mxu3 %vm639_vm0, %v1226_v36 }
  0xec   :  { %v821_v33 = vsel %vm637_vm1, %v816_v28, %v819_v29  ;;  %v877_v34 = vsel %vm637_vm1, %v619_v2, %v875_v31  ;;  %v905_v35 = vsel %vm637_vm1, %v635_v6, %v903_v32  ;;  %861 = vmatpush.msrb.mxu3 %v1438_v48 }
  0xed   :  { %v605_v37 = vpop.f32.mrf.mxu0 }
  0xee   :  { %862 = vmatpush.msrb.mxu3 %v1443_v49 }
  0xf0   :  { %863 = vmatpush.msrb.mxu3 %v1456_v52 }
  0xf2   :  { %864 = vmatpush.msrb.mxu3 %v1463_v53 }
  0xf4   :  { %865 = vmatpush.msrb.mxu3 %v1476_v56 }
  0xf6   :  { %866 = vmatpush.msrb.mxu3 %v1483_v59 }
  0xf8   :  { %867 = vmatpush.msrb.mxu3 %v1496_v0 }
  0xfa   :  { %868 = vmatpush.msrb.mxu3 %v1511_v7 }
 0x16e   :  { %v691_v39 = vpop.f32.mrf.mxu3 }
 0x16f   :  { %v694_v40 = vadd.f32 %v691_v39, %v670_v17 }
 0x171   :  { %1227 = vtanh.f32 %v694_v40 }
 0x177   :  { %v1228_v41 = vpop.eup %1227 }
 0x178   :  { %1153 = vmatmul.msk.f32.vlgmr.msra.gmra.mxu2 %vm639_vm0, %v1228_v41 }
 0x1fb   :  { %v721_v48 = vpop.f32.mrf.mxu2 }
 0x1fc   :  { %v724_v49 = vadd.f32 %v721_v48, %v700_v18 }
 0x1fe   :  { %1229 = vtanh.f32 %v724_v49 }
 0x204   :  { %v1230_v52 = vpop.eup %1229 }
 0x205   :  { %1154 = vmatmul.msk.f32.vlgmr.msra.gmra.mxu3 %vm639_vm0, %v1230_v52 }
 0x288   :  { %v751_v53 = vpop.f32.mrf.mxu3 }
 0x289   :  { %v754_v56 = vadd.f32 %v751_v53, %v730_v19 }
 0x28b   :  { %1231 = vtanh.f32 %v754_v56 }
 0x291   :  { %v1232_v59 = vpop.eup %1231 }
 0x292   :  { %1155 = vmatmul.msk.f32.vlgmr.msra.gmra.mxu0 %vm639_vm0, %v1232_v59 }
 0x30f   :  { %v781_v0 = vpop.f32.mrf.mxu0 }
 0x310   :  { %v784_v7 = vadd.f32 %v781_v0, %v760_v23 }
 0x312   :  { %1233 = vtanh.f32 %v784_v7 }
 0x318   :  { %v1234_v42 = vpop.eup %1233 }
 0x319   :  { %1156 = vmatmul.msk.f32.vlgmr.msra.gmra.mxu1 %vm639_vm0, %v1234_v42 }
 0x396   :  { %v811_v43 = vpop.f32.mrf.mxu1 }
 0x397   :  { %v814_v44 = vadd.f32 %v811_v43, %v790_v24 }
 0x399   :  { %1235 = vtanh.f32 %v814_v44 }
 0x39f   :  { %v1236_v45 = vpop.eup %1235 }
 0x3a0   :  { %1157 = vmatmul.msk.f32.vlgmr.msrb.gmra.mxu2 %vm639_vm0, %v1236_v45 }
 0x423   :  { %v842_v46 = vpop.f32.mrf.mxu2 }
 0x424   :  { %v845_v47 = vadd.f32 %v842_v46, %v821_v33 }
 0x426   :  { %1237 = vtanh.f32 %v845_v47 }
 0x42c   :  { %v1238_v50 = vpop.eup %1237 }
 0x42d   :  { %1158 = vmatmul.msk.f32.vlgmr.msrb.gmra.mxu3 %vm639_vm0, %v1238_v50 }
 0x4b0   :  { %v870_v51 = vpop.f32.mrf.mxu3 }
 0x4b1   :  { %v873_v54 = vadd.f32 %v870_v51, %v849_v30 }
 0x4b3   :  { %1239 = vtanh.f32 %v873_v54 }
 0x4b9   :  { %v1240_v55 = vpop.eup %1239 }
 0x4ba   :  { %1159 = vmatmul.msk.f32.vlgmr.msrb.gmra.mxu0 %vm639_vm0, %v1240_v55 }
 0x537   :  { %v898_v57 = vpop.f32.mrf.mxu0 }
 0x538   :  { %v901_v58 = vadd.f32 %v898_v57, %v877_v34 }
 0x53a   :  { %1241 = vtanh.f32 %v901_v58 }
 0x540   :  { %v1242_v60 = vpop.eup %1241 }
 0x541   :  { %1160 = vmatmul.msk.f32.vlgmr.msrb.gmra.mxu1 %vm639_vm0, %v1242_v60 }
 0x5be   :  { %v926_v61 = vpop.f32.mrf.mxu1 }
 0x5bf   :  { %v929_v62 = vadd.f32 %v926_v61, %v905_v35 }
 0x5c1   :  { %1243 = vtanh.f32 %v929_v62 }
 0x5c7   :  { %v1244_v63 = vpop.eup %1243 }
 0x5c8   :  { %932 = vst.msk [vmem:[#allocation4] sm:$0x3] %vm931_vm2, %v1244_v63 }
 0x5c9   :  { %943 = dma.vmem_to_hbm [thread:$0]  %s939_s26, 32, %s941_s29, [#allocation5]  }
 0x5ca   :  { %1271 = dma.done.wait [#allocation5], 32  }
 0x5cb   :  { %1272 = vsyncadd [#allocation5], 4294967264 }
 0x5cc   :  { %948 = vsyncpa [#allocation5], 1 }
 0x5cd   :  { %949 = vsyncmov [#allocation3] }
 0x5d0   :  { %s950_s30 = vpop.sfrf %949 }
 0x5d1   :  { %p1161_p0 = scmp.ne.s32.totalorder %s950_s30, 0 }
 0x5d3   :  { %954 = shalt.err (%p1161_p0)  }

</bundles_post_ra>
